<compile_context>
chip_gen: v7x
topology: tpu7x:2x2x1
jax: 0.10.0
libtpu: 0.0.40
codegen_flags: <defaults>
</compile_context>

<pallas_src>
import functools
import math

import jax
import jax.numpy as jnp
from jax.experimental import pallas as pl
from jax.experimental.pallas import tpu as pltpu


# ---------------------------------------------------------------------------
# Kernel
# ---------------------------------------------------------------------------
def _soundscape_kernel(
    xh_ref,            # (tile_s, 2D+2H)  fused [x | h_re | h_im] activations
    c0_ref,            # (tile_s, 2H)     [c_re | c_im]
    wg_ref,            # (2D+2H, 8H)      fused gate weights (resident)
    bg_ref,            # (1, 8H)
    wout_ref,          # (2H, 2D)
    bout_ref,          # (1, 2D)
    out_ref,           # (tile_s, 2D+2H)  packed [ out | h_im | c_im ]
):
    H2 = c0_ref.shape[-1]          # 2H  (lanes = [re | im])
    H = H2 // 2
    Dout = wout_ref.shape[-1]      # 2D

    # Single fused gate matmul for both LSTM cells: (tile_s, 8H).
    gates = (
        jnp.dot(xh_ref[...], wg_ref[...], preferred_element_type=jnp.float32)
        + bg_ref[...]
    )

    # Lane layout of gates: [ i | f | o | g ], each block 2H wide ([re|im]).
    ifo = jax.nn.sigmoid(gates[:, : 3 * H2])
    g = jnp.tanh(gates[:, 3 * H2:])
    i = ifo[:, :H2]
    f = ifo[:, H2:2 * H2]
    o = ifo[:, 2 * H2:]

    c1 = f * c0_ref[...] + i * g       # both cells at once, lanes [c_re|c_im]
    h1 = o * jnp.tanh(c1)              # lanes = [h_re | h_im]

    # Output projection consumes the fused hidden directly (no concat).
    y = (
        jnp.dot(h1, wout_ref[...], preferred_element_type=jnp.float32)
        + bout_ref[...]
    )

    # Packed, lane-dense output block: [ y (2D) | h_im (H) | c_im (H) ].
    # (Only the Im halves of h1/c1 are consumed by the wrapper.)
    out_ref[:, :Dout] = y
    out_ref[:, Dout:Dout + H] = h1[:, H:]
    out_ref[:, Dout + H:] = c1[:, H:]


# ---------------------------------------------------------------------------
# Parameters & host-side fusion (done ONCE, outside the forward path)
# ---------------------------------------------------------------------------
def init_params(key, input_dimension, input_size_reducer=1.0):
    D = input_dimension
    H = math.ceil(D * input_size_reducer)
    ks = jax.random.split(key, 10)
    s = 0.1
    return {
        "input_dimension": D,
        "hidden_dim": H,
        # linearHidden: Linear(2D, H)   (stored pre-transposed: (in, out))
        "w_lin": jax.random.normal(ks[0], (2 * D, H), jnp.float32) * s,
        "b_lin": jax.random.normal(ks[1], (1, H), jnp.float32) * s,
        # lstm_Re: W_ih/W_hh stored as (in, 4H), gate order [i|f|g|o];
        # bias = b_ih + b_hh folded.
        "w_ih_re": jax.random.normal(ks[2], (H, 4 * H), jnp.float32) * s,
        "w_hh_re": jax.random.normal(ks[3], (H, 4 * H), jnp.float32) * s,
        "b_re": jax.random.normal(ks[4], (1, 4 * H), jnp.float32) * s,
        # lstm_Im
        "w_ih_im": jax.random.normal(ks[5], (H, 4 * H), jnp.float32) * s,
        "w_hh_im": jax.random.normal(ks[6], (H, 4 * H), jnp.float32) * s,
        "b_im": jax.random.normal(ks[7], (1, 4 * H), jnp.float32) * s,
        # out: Linear(2H, 2D); rows 0:H multiply lstm_Re output, H:2H lstm_Im.
        "w_out": jax.random.normal(ks[8], (2 * H, 2 * D), jnp.float32) * s,
        "b_out": jax.random.normal(ks[9], (1, 2 * D), jnp.float32) * s,
    }


# Kernel gate block order (indices into PyTorch's [i, f, g, o]): i, f, o, g.
_GATE_ORDER = (0, 1, 3, 2)


def _interleave_gates(a_re, a_im, H):
    """(.., 4H) per-branch gate cols [i|f|g|o] -> (.., 8H) fused cols
    [i_re,i_im | f_re,f_im | o_re,o_im | g_re,g_im]."""
    parts = []
    for k in _GATE_ORDER:
        parts.append(a_re[..., k * H:(k + 1) * H])
        parts.append(a_im[..., k * H:(k + 1) * H])
    return jnp.concatenate(parts, axis=-1)


def prepare_soundscape(params):
    """Fold linearHidden into the gate weights, fuse the Re/Im LSTMs, and
    vertically stack the x / h gate weights into one matrix.  Call ONCE."""
    H = params["hidden_dim"]
    w_lin, b_lin = params["w_lin"], params["b_lin"]

    wxg_re = w_lin @ params["w_ih_re"]                       # (2D, 4H)
    wxg_im = w_lin @ params["w_ih_im"]
    bg_re = b_lin @ params["w_ih_re"] + params["b_re"]       # (1, 4H)
    bg_im = b_lin @ params["w_ih_im"] + params["b_im"]

    wx = _interleave_gates(wxg_re, wxg_im, H)                # (2D, 8H)
    bg = _interleave_gates(bg_re, bg_im, H)                  # (1, 8H)

    z = jnp.zeros((H, 4 * H), jnp.float32)
    wh = jnp.concatenate(
        [
            _interleave_gates(params["w_hh_re"], z, H),      # rows for h_re
            _interleave_gates(z, params["w_hh_im"], H),      # rows for h_im
        ],
        axis=0,
    )                                                        # (2H, 8H)
    w_gate = jnp.concatenate([wx, wh], axis=0)               # (2D+2H, 8H)
    return {
        "w_gate": w_gate,
        "b_gate": bg,
        "w_out": params["w_out"],
        "b_out": params["b_out"],
    }


# ---------------------------------------------------------------------------
# Forward wrapper
# ---------------------------------------------------------------------------
@functools.partial(jax.jit, static_argnames=("seq_len", "tile_max"))
def soundscape_forward(fused, x, hidden_Re, hidden_Im, *, seq_len, tile_max=2048):
    w_gate, bg = fused["w_gate"], fused["b_gate"]
    w_out, b_out = fused["w_out"], fused["b_out"]
    H = w_out.shape[0] // 2
    D = w_out.shape[1] // 2
    S = seq_len

    K = 2 * D + 2 * H          # fused activation / gate-weight K dim
    OUT_W = 2 * D + 2 * H      # packed output lane width: out | h_im | c_im

    # torch.reshape(torch.transpose(x, 0, 1), (1, S, 2D)) -> drop batch dim.
    x2d = jnp.reshape(jnp.swapaxes(x, 0, 1), (S, 2 * D))
    # Single fused activation slab [x | h_re | h_im] and cell slab [c_re | c_im].
    xh = jnp.concatenate([x2d, hidden_Re[0][0], hidden_Im[0][0]], axis=-1)   # (S, K)
    c0 = jnp.concatenate([hidden_Re[1][0], hidden_Im[1][0]], axis=-1)        # (S, 2H)

    # Row tiling over S (effective batch).  No host-side padding: the ragged
    # last block is handled by Pallas (OOB writes masked; rows independent).
    n_steps = pl.cdiv(S, tile_max)
    if n_steps == 1:
        tile_s = S
    else:
        tile_s = min(tile_max, ((pl.cdiv(S, n_steps) + 7) // 8) * 8)
    grid = (pl.cdiv(S, tile_s),)

    # VMEM budget: double-buffered streamed blocks + resident weights, x2
    # headroom, clamped well below every generation's physical VMEM.
    item = 4  # f32
    streamed = 2 * tile_s * (K + 2 * H + OUT_W) * item
    resident = (K * 8 * H + 8 * H + 2 * H * 2 * D + 2 * D) * item
    vmem_limit = int(min(32 * 2 ** 20, max(8 * 2 ** 20, 2 * (streamed + resident))))

    def row(feat):
        return pl.BlockSpec((tile_s, feat), lambda i: (i, 0))

    def const(r, c):
        return pl.BlockSpec((r, c), lambda i: (0, 0))

    packed = pl.pallas_call(
        _soundscape_kernel,
        out_shape=jax.ShapeDtypeStruct((S, OUT_W), jnp.float32),
        grid=grid,
        in_specs=[
            row(K), row(2 * H),
            const(K, 8 * H), const(1, 8 * H),
            const(2 * H, 2 * D), const(1, 2 * D),
        ],
        out_specs=row(OUT_W),
        compiler_params=pltpu.CompilerParams(
            dimension_semantics=("parallel",),
            vmem_limit_bytes=vmem_limit,
        ),
    )(xh, c0, w_gate, bg, w_out, b_out)

    # torch.reshape(out, (D, 2, S)) — raw row-major reshape, same as PyTorch.
    out = jnp.reshape(packed[:, : 2 * D], (D, 2, S))
    # Bug-for-bug: hidden_Re is overwritten by lstm_Im's hidden/cell state;
    # hidden_Im is returned unchanged.
    hidden_Re_new = (
        packed[None, :, 2 * D:2 * D + H],
        packed[None, :, 2 * D + H:],
    )
    return out, hidden_Re_new, hidden_Im


# ---------------------------------------------------------------------------
# Pure-JAX reference (original, un-fused math) for correctness validation
# ---------------------------------------------------------------------------
def _reference_forward(params, x, hidden_Re, hidden_Im, S):
    D = params["input_dimension"]
    H = params["hidden_dim"]
    xr = jnp.reshape(jnp.swapaxes(x, 0, 1), (S, 2 * D))
    xh = xr @ params["w_lin"] + params["b_lin"]

    def cell(h0, c0, wih, whh, b):
        g = xh @ wih + h0 @ whh + b
        i = jax.nn.sigmoid(g[:, :H])
        f = jax.nn.sigmoid(g[:, H:2 * H])
        gg = jnp.tanh(g[:, 2 * H:3 * H])
        o = jax.nn.sigmoid(g[:, 3 * H:])
        c1 = f * c0 + i * gg
        return o * jnp.tanh(c1), c1

    h_re, _ = cell(hidden_Re[0][0], hidden_Re[1][0],
                   params["w_ih_re"], params["w_hh_re"], params["b_re"])
    h_im, c_im = cell(hidden_Im[0][0], hidden_Im[1][0],
                      params["w_ih_im"], params["w_hh_im"], params["b_im"])
    out = jnp.concatenate([h_re, h_im], -1) @ params["w_out"] + params["b_out"]
    return jnp.reshape(out, (D, 2, S)), h_im, c_im


# ---------------------------------------------------------------------------
if __name__ == "__main__":
    D = 16            # input_dimension  -> H = 16, 8H = 128 (full MXU lane width)
    S = 8             # seq_len (effective batch of the single LSTM step)
    key = jax.random.PRNGKey(0)
    kp, kx, kh = jax.random.split(key, 3)

    params = init_params(kp, D, input_size_reducer=1.0)
    H = params["hidden_dim"]
    fused = prepare_soundscape(params)          # hoisted: computed once

    # x of shape (2*D, S), as implied by the forward's transpose+reshape.
    x = jax.random.normal(kx, (2 * D, S), jnp.float32)

    # init_hidden_noise analogue: (n_layers=1, batch=S, H) tensors.
    khs = jax.random.split(kh, 4)
    hidden_Re = (jax.random.normal(khs[0], (1, S, H), jnp.float32),
                 jax.random.normal(khs[1], (1, S, H), jnp.float32))
    hidden_Im = (jax.random.normal(khs[2], (1, S, H), jnp.float32),
                 jax.random.normal(khs[3], (1, S, H), jnp.float32))

    out, hid_Re, hid_Im = soundscape_forward(fused, x, hidden_Re, hidden_Im,
                                             seq_len=S)
    jax.block_until_ready((out, hid_Re, hid_Im))

    # Correctness vs. the un-fused pure-JAX reference.
    ref_out, ref_h, ref_c = _reference_forward(params, x, hidden_Re, hidden_Im, S)
    assert out.shape == (D, 2, S)
    assert hid_Re[0].shape == (1, S, H) and hid_Re[1].shape == (1, S, H)
    assert jnp.allclose(out, ref_out, atol=1e-4, rtol=1e-4)
    assert jnp.allclose(hid_Re[0][0], ref_h, atol=1e-4, rtol=1e-4)
    assert jnp.allclose(hid_Re[1][0], ref_c, atol=1e-4, rtol=1e-4)
    assert jnp.allclose(hid_Im[0], hidden_Im[0]) and jnp.allclose(hid_Im[1], hidden_Im[1])

    # Also exercise the multi-step grid + ragged (masked) last block path.
    S2 = 20
    kx2, kh2 = jax.random.split(jax.random.PRNGKey(1))
    x2 = jax.random.normal(kx2, (2 * D, S2), jnp.float32)
    kh2s = jax.random.split(kh2, 4)
    hRe2 = (jax.random.normal(kh2s[0], (1, S2, H), jnp.float32),
            jax.random.normal(kh2s[1], (1, S2, H), jnp.float32))
    hIm2 = (jax.random.normal(kh2s[2], (1, S2, H), jnp.float32),
            jax.random.normal(kh2s[3], (1, S2, H), jnp.float32))
    out2, hRe2n, _ = soundscape_forward(fused, x2, hRe2, hIm2,
                                        seq_len=S2, tile_max=8)
    jax.block_until_ready((out2, hRe2n))
    r_out2, r_h2, r_c2 = _reference_forward(params, x2, hRe2, hIm2, S2)
    assert jnp.allclose(out2, r_out2, atol=1e-4, rtol=1e-4)
    assert jnp.allclose(hRe2n[0][0], r_h2, atol=1e-4, rtol=1e-4)
    assert jnp.allclose(hRe2n[1][0], r_c2, atol=1e-4, rtol=1e-4)

    print("KERNEL_OK")
</pallas_src>

<mosaic_0001>
module attributes {stable_mosaic.version = 11 : i64} {
  func.func @_soundscape_kernel(%arg0: i32, %arg1: memref<8x64xf32, #tpu.memory_space<vmem>>, %arg2: memref<8x32xf32, #tpu.memory_space<vmem>>, %arg3: memref<64x128xf32, #tpu.memory_space<vmem>>, %arg4: memref<1x128xf32, #tpu.memory_space<vmem>>, %arg5: memref<32x32xf32, #tpu.memory_space<vmem>>, %arg6: memref<1x32xf32, #tpu.memory_space<vmem>>, %arg7: memref<8x64xf32, #tpu.memory_space<vmem>>) attributes {dimension_semantics = [#tpu.dimension_semantics<parallel>], iteration_bounds = array<i64: 1>, scalar_prefetch = 0 : i64, scratch_operands = 0 : i64, tpu.core_type = #tpu.core_type<tc>, window_params = [{transform_indices = @transform_0, window_bounds = array<i64: 8, 64>}, {transform_indices = @transform_1, window_bounds = array<i64: 8, 32>}, {pipeline_mode = #tpu.pipeline_mode<synchronous>, transform_indices = @transform_2, window_bounds = array<i64: 64, 128>}, {pipeline_mode = #tpu.pipeline_mode<synchronous>, transform_indices = @transform_3, window_bounds = array<i64: 1, 128>}, {pipeline_mode = #tpu.pipeline_mode<synchronous>, transform_indices = @transform_4, window_bounds = array<i64: 32, 32>}, {pipeline_mode = #tpu.pipeline_mode<synchronous>, transform_indices = @transform_5, window_bounds = array<i64: 1, 32>}, {transform_indices = @transform_6, window_bounds = array<i64: 8, 64>}]} {
    %c0 = arith.constant 0 : index
    %c0_0 = arith.constant 0 : index
    %0 = vector.load %arg1[%c0, %c0_0] : memref<8x64xf32, #tpu.memory_space<vmem>>, vector<8x64xf32>
    %c0_1 = arith.constant 0 : index
    %c0_2 = arith.constant 0 : index
    %1 = vector.load %arg3[%c0_1, %c0_2] : memref<64x128xf32, #tpu.memory_space<vmem>>, vector<64x128xf32>
    %cst = arith.constant dense<0.000000e+00> : vector<8x128xf32>
    %2 = tpu.matmul %0, %1, %cst {dimension_numbers = #tpu.dot_dimension_numbers<[1], [0], [0], [1], [0, 0, 1, 1], [], []>} : vector<8x64xf32>, vector<64x128xf32>, vector<8x128xf32> -> vector<8x128xf32>
    %c0_3 = arith.constant 0 : index
    %c0_4 = arith.constant 0 : index
    %3 = vector.load %arg4[%c0_3, %c0_4] : memref<1x128xf32, #tpu.memory_space<vmem>>, vector<1x128xf32>
    %4 = vector.broadcast %3 : vector<1x128xf32> to vector<8x128xf32>
    %5 = arith.addf %2, %4 : vector<8x128xf32>
    %6 = vector.extract_strided_slice %5 {offsets = [0, 0], sizes = [8, 96], strides = [1, 1]} : vector<8x128xf32> to vector<8x96xf32>
    %7 = arith.negf %6 : vector<8x96xf32>
    %8 = math.exp %7 : vector<8x96xf32>
    %cst_5 = arith.constant 1.000000e+00 : f32
    %9 = vector.broadcast %cst_5 : f32 to vector<8x96xf32>
    %10 = arith.addf %9, %8 : vector<8x96xf32>
    %11 = arith.divf %9, %10 : vector<8x96xf32>
    %12 = vector.extract_strided_slice %5 {offsets = [0, 96], sizes = [8, 32], strides = [1, 1]} : vector<8x128xf32> to vector<8x32xf32>
    %13 = math.tanh %12 : vector<8x32xf32>
    %14 = vector.extract_strided_slice %11 {offsets = [0, 0], sizes = [8, 32], strides = [1, 1]} : vector<8x96xf32> to vector<8x32xf32>
    %15 = vector.extract_strided_slice %11 {offsets = [0, 32], sizes = [8, 32], strides = [1, 1]} : vector<8x96xf32> to vector<8x32xf32>
    %16 = vector.extract_strided_slice %11 {offsets = [0, 64], sizes = [8, 32], strides = [1, 1]} : vector<8x96xf32> to vector<8x32xf32>
    %c0_6 = arith.constant 0 : index
    %c0_7 = arith.constant 0 : index
    %17 = vector.load %arg2[%c0_6, %c0_7] : memref<8x32xf32, #tpu.memory_space<vmem>>, vector<8x32xf32>
    %18 = arith.mulf %15, %17 : vector<8x32xf32>
    %19 = arith.mulf %14, %13 : vector<8x32xf32>
    %20 = arith.addf %18, %19 : vector<8x32xf32>
    %21 = math.tanh %20 : vector<8x32xf32>
    %22 = arith.mulf %16, %21 : vector<8x32xf32>
    %c0_8 = arith.constant 0 : index
    %c0_9 = arith.constant 0 : index
    %23 = vector.load %arg5[%c0_8, %c0_9] : memref<32x32xf32, #tpu.memory_space<vmem>>, vector<32x32xf32>
    %cst_10 = arith.constant dense<0.000000e+00> : vector<8x32xf32>
    %24 = tpu.matmul %22, %23, %cst_10 {dimension_numbers = #tpu.dot_dimension_numbers<[1], [0], [0], [1], [0, 0, 1, 1], [], []>} : vector<8x32xf32>, vector<32x32xf32>, vector<8x32xf32> -> vector<8x32xf32>
    %c0_11 = arith.constant 0 : index
    %c0_12 = arith.constant 0 : index
    %25 = vector.load %arg6[%c0_11, %c0_12] : memref<1x32xf32, #tpu.memory_space<vmem>>, vector<1x32xf32>
    %26 = vector.broadcast %25 : vector<1x32xf32> to vector<8x32xf32>
    %27 = arith.addf %24, %26 : vector<8x32xf32>
    %c0_13 = arith.constant 0 : index
    %c0_14 = arith.constant 0 : index
    %28 = vector.load %arg7[%c0_13, %c0_14] : memref<8x64xf32, #tpu.memory_space<vmem>>, vector<8x32xf32>
    tpu.vector_store %arg7[%c0_13, %c0_14], %27 {strides = array<i32>} : memref<8x64xf32, #tpu.memory_space<vmem>>, vector<8x32xf32>,
    %29 = vector.extract_strided_slice %22 {offsets = [0, 16], sizes = [8, 16], strides = [1, 1]} : vector<8x32xf32> to vector<8x16xf32>
    %c0_15 = arith.constant 0 : index
    %c32 = arith.constant 32 : index
    %30 = vector.load %arg7[%c0_15, %c32] : memref<8x64xf32, #tpu.memory_space<vmem>>, vector<8x16xf32>
    tpu.vector_store %arg7[%c0_15, %c32], %29 {strides = array<i32>} : memref<8x64xf32, #tpu.memory_space<vmem>>, vector<8x16xf32>,
    %31 = vector.extract_strided_slice %20 {offsets = [0, 16], sizes = [8, 16], strides = [1, 1]} : vector<8x32xf32> to vector<8x16xf32>
    %c0_16 = arith.constant 0 : index
    %c48 = arith.constant 48 : index
    %32 = vector.load %arg7[%c0_16, %c48] : memref<8x64xf32, #tpu.memory_space<vmem>>, vector<8x16xf32>
    tpu.vector_store %arg7[%c0_16, %c48], %31 {strides = array<i32>} : memref<8x64xf32, #tpu.memory_space<vmem>>, vector<8x16xf32>,
    return
  }
  func.func @transform_0(%arg0: i32) -> (i32, i32) {
    %c0_i32 = arith.constant 0 : i32
    %c0_i32_0 = arith.constant 0 : i32
    return %arg0, %c0_i32 : i32, i32
  }
  func.func @transform_1(%arg0: i32) -> (i32, i32) {
    %c0_i32 = arith.constant 0 : i32
    %c0_i32_0 = arith.constant 0 : i32
    return %arg0, %c0_i32 : i32, i32
  }
  func.func @transform_2(%arg0: i32) -> (i32, i32) {
    %c0_i32 = arith.constant 0 : i32
    %c0_i32_0 = arith.constant 0 : i32
    %c0_i32_1 = arith.constant 0 : i32
    return %c0_i32, %c0_i32_0 : i32, i32
  }
  func.func @transform_3(%arg0: i32) -> (i32, i32) {
    %c0_i32 = arith.constant 0 : i32
    %c0_i32_0 = arith.constant 0 : i32
    %c0_i32_1 = arith.constant 0 : i32
    return %c0_i32, %c0_i32_0 : i32, i32
  }
  func.func @transform_4(%arg0: i32) -> (i32, i32) {
    %c0_i32 = arith.constant 0 : i32
    %c0_i32_0 = arith.constant 0 : i32
    %c0_i32_1 = arith.constant 0 : i32
    return %c0_i32, %c0_i32_0 : i32, i32
  }
  func.func @transform_5(%arg0: i32) -> (i32, i32) {
    %c0_i32 = arith.constant 0 : i32
    %c0_i32_0 = arith.constant 0 : i32
    %c0_i32_1 = arith.constant 0 : i32
    return %c0_i32, %c0_i32_0 : i32, i32
  }
  func.func @transform_6(%arg0: i32) -> (i32, i32) {
    %c0_i32 = arith.constant 0 : i32
    %c0_i32_0 = arith.constant 0 : i32
    return %arg0, %c0_i32 : i32, i32
  }
}

</mosaic_0001>

<bundles_post_ra>
// kernel: soundscape_forward.1
= control target key start
LH: loop header
LB: loop body
LE: loop exit
PB: predicated region body
PF: predicated region fallthrough
CT: control target
= control target key end

     0   :  { %11 = vsyncpa [#allocation3], 0  ;;  %s513_s0 = inlined_call_operand.vmem [shape: f32[8,64], index: 0, kind: input, shape index: {}]   ;;  %s514_s1 = inlined_call_operand.vmem [shape: f32[8,32], index: 1, kind: input, shape index: {}]   ;;  %s515_s2 = inlined_call_operand.vmem [shape: f32[64,128], index: 2, kind: input, shape index: {}]   ;;  %s516_s3 = inlined_call_operand.vmem [shape: f32[1,128], index: 3, kind: input, shape index: {}]   ;;  %s517_s4 = inlined_call_operand.hbm [shape: f32[32,32], index: 4, kind: input, shape index: {}]   ;;  %s518_s5 = inlined_call_operand.hbm [shape: f32[1,32], index: 5, kind: input, shape index: {}]   ;;  %s519_s6 = inlined_call_operand.vmem [shape: f32[8,64], index: 6, kind: output, shape index: {}]  }
   0x1   :  { %12 = vsyncpa [#allocation5], 0  ;;  %s402_s21 = smov [#allocation2]   ;;  %s354_s25 = scalar_lea.hbm %s517_s4, 512 }
   0x2   :  { %s26_s22 = sshll.u32 %s402_s21, 4  ;;  %p355_p0 = scmp.ne.s32.totalorder %s517_s4, %s354_s25  ;;  %s27_s22 = int_to_ptr.vmem [resolvable:$true] %s26_s22 }
   0x3   :  { %p358_p1 = scmp.lt.u32.totalorder %s354_s25, %s517_s4 }
   0x5   :  { %p360_p2 = pnand %p358_p1, %p355_p0 }
   0x7   :  { %363 = shalt.err (!%p360_p2)
}
   0x8   :  { %s364_s30 = scalar_lea.vmem %s27_s22, 512  ;;  %p369_p4 = scmp.lt.s32.totalorder %s27_s22, %s27_s22 }
   0x9   :  { %p365_p3 = scmp.ne.s32.totalorder %s27_s22, %s364_s30  ;;  %p370_p5 = scmp.lt.s32.totalorder %s364_s30, %s364_s30 }
   0xb   :  { %p371_p6 = por %p370_p5, %p369_p4 }
   0xd   :  { %p372_p7 = pnand %p371_p6, %p365_p3 }
   0xf   :  { %375 = shalt.err (!%p372_p7)
}
  0x10   :  { %s403_s7 = smov 128   ;;  %s404_s8 = smov 8  }
  0x11   :  { %32 = dma.hbm_to_vmem [thread:$0]  %s517_s4, 512, %s27_s22, [#allocation3], %s403_s7, %s403_s7, %s404_s8  }
  0x12   :  { %s405_s11 = smov [#allocation4]   ;;  %s376_s15 = scalar_lea.hbm %s518_s5, 16 }
  0x13   :  { %s39_s12 = sshll.u32 %s405_s11, 4  ;;  %p377_p8 = scmp.ne.s32.totalorder %s518_s5, %s376_s15  ;;  %s40_s12 = int_to_ptr.vmem [resolvable:$true] %s39_s12 }
  0x14   :  { %p380_p9 = scmp.lt.u32.totalorder %s376_s15, %s518_s5 }
  0x16   :  { %p382_p10 = pnand %p380_p9, %p377_p8 }
  0x18   :  { %385 = shalt.err (!%p382_p10)
}
  0x19   :  { %s386_s20 = scalar_lea.vmem %s40_s12, 16  ;;  %s390_s4 = scalar_lea.vmem %s40_s12, 32 }
  0x1a   :  { %p387_p11 = scmp.ne.s32.totalorder %s40_s12, %s386_s20  ;;  %p391_p12 = scmp.lt.s32.totalorder %s40_s12, %s40_s12 }
  0x1b   :  { %p392_p13 = scmp.lt.s32.totalorder %s390_s4, %s386_s20 }
  0x1d   :  { %p393_p0 = por %p392_p13, %p391_p12 }
  0x1f   :  { %p394_p1 = pnand %p393_p0, %p387_p11 }
  0x21   :  { %397 = shalt.err (!%p394_p1)
}
  0x22   :  { %42 = dma.hbm_to_vmem [thread:$0]  %s518_s5, 16, %s40_s12, [#allocation5]  }
  0x23   :  { %398 = dma.done.wait [#allocation3], 512  }
  0x24   :  { %399 = vsyncadd [#allocation3], 4294966784 }
  0x25   :  { %400 = dma.done.wait [#allocation5], 16  }
  0x26   :  { %401 = vsyncadd [#allocation5], 4294967280  ;;  %v406_v0 = vmov 0.0|0.0   ;;  %vm407_vm0 = vmmov 0   ;;  %v408_v1 = vmov 0.0   ;;  %v50_v2 = vld [vmem:[%s515_s2] sm:$0xff] }
  0x27   :  { %318 = vmatprep.subr.bf16.mxu0 %v406_v0  ;;  %304 = vmatprep.mubr.msk.f32.mxu0 %vm407_vm0, %v408_v1  ;;  %v51_v3 = vld [vmem:[%s515_s2 + $0x8] sm:$0xff]  ;;  %v52_v4 = vld [vmem:[%s515_s2 + $0x10] sm:$0xff]  ;;  %v53_v6 = vld [vmem:[%s515_s2 + $0x18] sm:$0xff]  ;;  %vm65_vm1 = vcmask 523264   ;;  %vm182_vm2 = vcmask 261120   ;;  %vm259_vm3 = vcmask 392448  }
  0x28   :  { %330 = vmatprep.subr.bf16.mxu1 %v406_v0  ;;  %315 = vmatprep.mubr.msk.f32.mxu1 %vm407_vm0, %v408_v1  ;;  %v319_v5 = vpack.c.bf16 %v51_v3, %v50_v2  ;;  %v322_v7 = vpack.c.bf16 %v53_v6, %v52_v4  ;;  %v54_v8 = vld [vmem:[%s515_s2 + $0x20] sm:$0xff]  ;;  %v55_v9 = vld [vmem:[%s515_s2 + $0x28] sm:$0xff]  ;;  %v56_v11 = vld [vmem:[%s515_s2 + $0x30] sm:$0xff]  ;;  %vm261_vm4 = vcmask 523648  }
  0x29   :  { %v325_v10 = vpack.c.bf16 %v55_v9, %v54_v8  ;;  %v57_v12 = vld [vmem:[%s515_s2 + $0x38] sm:$0xff]  ;;  %v49_v14 = vld [vmem:[%s513_s0] sm:$0xff]  ;;  %s409_s2 = smov 32   ;;  %v169_v32 = vld [vmem:[#allocation2 + $0x8] sm:$0xff]  ;;  %s410_s0 = smov 80  }
  0x2a   :  { %320 = vmatpush3.bf16.msra.mxu0 %v319_v5  ;;  %v328_v13 = vpack.c.bf16 %v57_v12, %v56_v11  ;;  %v269_v15 = vld [vmem:[%s516_s3] ss:$0 sm:$0xff]  ;;  %v170_v33 = vld [vmem:[#allocation2 + $0x10] sm:$0xff]  ;;  %v171_v35 = vld [vmem:[#allocation2 + $0x18] sm:$0xff] }
  0x2b   :  { %321 = vmatprep.subr.bf16.mxu0 %v406_v0  ;;  %v146_v20 = vld [vmem:[%s514_s1] sm:$0xff]  ;;  %v334_v36 = vpack.c.bf16 %v171_v35, %v170_v33  ;;  %s411_s1 = smov 64  }
  0x2c   :  { %v168_v31 = vld [vmem:[#allocation2] sm:$0xff] }
  0x2d   :  { %v331_v34 = vpack.c.bf16 %v169_v32, %v168_v31  ;;  %v272_v41 = vld [vmem:[#allocation4] ss:$0 sm:$0xff] }
  0x2e   :  { %323 = vmatpush3.bf16.msra.mxu0 %v322_v7 }
  0x2f   :  { %324 = vmatprep.subr.bf16.mxu0 %v406_v0  ;;  %332 = vmatpush3.bf16.msra.mxu1 %v331_v34 }
  0x30   :  { %333 = vmatprep.subr.bf16.mxu1 %v406_v0 }
  0x32   :  { %326 = vmatpush3.bf16.msra.mxu0 %v325_v10 }
  0x33   :  { %327 = vmatprep.subr.bf16.mxu0 %v406_v0  ;;  %335 = vmatpush3.bf16.msra.mxu1 %v334_v36 }
  0x36   :  { %329 = vmatpush3.bf16.msra.mxu0 %v328_v13 }
  0x39   :  { %305 = vmatmul.mubr.msk.f32.vlgmr.msra.gmra.mrb[0].mxu0 %vm65_vm1, %v49_v14 }
 0x10c   :  { %v135_v16 = vpop.f32.mrb[0].mxu0 }
 0x10d   :  { %v136_v17 = vadd.f32 %v269_v15, %v135_v16  ;;  %v306_v18 = vpop.f32.mrb[1].mxu0 }
 0x10f   :  { %346 = vtanh.f32 %v136_v17  ;;  %v271_v21 = vmul.f32 -1.442695, %v136_v17 }
 0x111   :  { %348 = vpow2.f32 %v271_v21 }
 0x119   :  { %v347_v19 = vpop.eup %346 }
 0x11a   :  { %153 = vrot.lane.b32.xlu0 %v347_v19, %s409_s2 }
 0x11b   :  { %v349_v22 = vpop.eup %348 }
 0x11c   :  { %v142_v23 = vadd.f32 1.0, %v349_v22 }
 0x11e   :  { %148 = vrot.lane.b32.xlu0 %v146_v20, %s409_s2  ;;  %350 = vrcp.f32 %v142_v23 }
 0x128   :  { %v351_v24 = vpop.eup %350 }
 0x18c   :  { %v154_v25 = vpop.permute.xlu0 %153 }
 0x18d   :  { %v156_v26 = vmul.f32 %v351_v24, %v154_v25 }
 0x18f   :  { %158 = vrot.lane.b32.xlu1 %v156_v26, %s409_s2 }
 0x190   :  { %v149_v27 = vpop.permute.xlu0 %148 }
 0x191   :  { %v151_v28 = vmul.f32 %v351_v24, %v149_v27 }
 0x201   :  { %v159_v29 = vpop.permute.xlu1 %158 }
 0x202   :  { %v161_v30 = vadd.f32 %v159_v29, %v151_v28 }
 0x204   :  { %352 = vtanh.f32 %v161_v30 }
 0x20e   :  { %v353_v37 = vpop.eup %352 }
 0x20f   :  { %164 = vrot.lane.b32.xlu1 %v353_v37, %s409_s2 }
 0x281   :  { %v165_v38 = vpop.permute.xlu1 %164 }
 0x282   :  { %v167_v39 = vmul.f32 %v351_v24, %v165_v38 }
 0x284   :  { %256 = vrot.lane.b32.xlu1 %v167_v39, %s410_s0  ;;  %180 = vrot.lane.b32.xlu0 %v167_v39, %s411_s1 }
 0x2f6   :  { %v181_v40 = vpop.permute.xlu0 %180  ;;  %v257_v45 = vpop.permute.xlu1 %256 }
 0x2f7   :  { %316 = vmatmul.mubr.msk.f32.vlgmr.msra.gmra.mrb[0].mxu1 %vm182_vm2, %v181_v40 }
 0x3ca   :  { %v251_v42 = vpop.f32.mrb[0].mxu1 }
 0x3cb   :  { %v252_v43 = vadd.f32 %v272_v41, %v251_v42  ;;  %v317_v44 = vpop.f32.mrb[1].mxu1 }
 0x3cd   :  { %255 = vst.msk [vmem:[%s519_s6] sm:$0xff] %vm182_vm2, %v252_v43 }
 0x3ce   :  { %260 = vst.msk [vmem:[%s519_s6] sm:$0xff] %vm259_vm3, %v257_v45 }
 0x3cf   :  { %262 = vst.msk [vmem:[%s519_s6] sm:$0xff] %vm261_vm4, %v161_v30 }
 0x3d0   :  { %267 = vsyncpa [#allocation3], 1 }
 0x3d1   :  { %268 = vsyncpa [#allocation5], 1 }

</bundles_post_ra>
